<compile_context>
chip_gen: v7x
topology: tpu7x:2x2x1
jax: 0.10.0
libtpu: 0.0.40
codegen_flags: <defaults>
</compile_context>

<pallas_src>
import jax
import jax.numpy as jnp
import numpy as np
from jax.experimental import pallas as pl
from jax.experimental.pallas import tpu as pltpu

# Deterministic "model" scalars (synthetic init, no checkpoint load).
BIAS = 0.1
SEV_PENALTY = 0.1
POSITIVE_PENALTY = 0.1


def _sigmoid(z):
    return 1.0 / (1.0 + jnp.exp(-z))


def _round_up(v, m):
    return ((v + m - 1) // m) * m


def _make_kernel(bias, sev_penalty, positive_penalty, n_valid, tile_n):
    def kernel(out_ref, tgt_ref, x_ref, keepT_ref, c_ref, w_ref,
               dmean_ref, fmean_ref,
               bce_o, total_o, sev_o,
               bce_acc, num_acc, den_acc):
        i = pl.program_id(0)

        @pl.when(i == 0)
        def _init():
            bce_acc[...] = jnp.zeros_like(bce_acc)
            num_acc[...] = jnp.zeros_like(num_acc)
            den_acc[...] = jnp.zeros_like(den_acc)

        x = x_ref[...]                                        # (T, D)
        w = w_ref[...]                                        # (1, D)
        xw = x * w                                            # (T, D)

        # All M counterfactual logits in one lane-dense MXU matmul.
        z = jnp.dot(xw, keepT_ref[...],
                    preferred_element_type=jnp.float32)       # (T, M)
        probs = _sigmoid(z + c_ref[...] + bias)               # (T, M)
        min_p = jnp.min(probs, axis=-1, keepdims=True)        # (T, 1)

        # Model prediction on the original samples (row-sum of xw).
        s = jnp.sum(xw, axis=-1, keepdims=True) + bias        # (T, 1)
        y_pred = _sigmoid(s)

        # Row-validity mask for the padded tail of the last tile.
        row = i * tile_n + jax.lax.broadcasted_iota(jnp.int32, (tile_n, 1), 0)
        valid = (row < n_valid).astype(jnp.float32)           # (T, 1)
        gt = (y_pred > 0.5).astype(jnp.float32) * valid       # (T, 1)

        num_acc[...] += jnp.sum(jnp.maximum(min_p - 0.5, -0.05) * gt,
                                keepdims=True)                # (1, 1)
        den_acc[...] += jnp.sum(gt, keepdims=True)            # (1, 1)

        # BCELoss partial sum (log terms clamped at -100 like torch BCELoss).
        o = out_ref[...]
        t = tgt_ref[...]
        log_o = jnp.maximum(jnp.log(o), -100.0)
        log_1mo = jnp.maximum(jnp.log(1.0 - o), -100.0)
        bce_acc[...] += jnp.sum((t * log_o + (1.0 - t) * log_1mo) * valid,
                                keepdims=True)                # (1, 1)

        @pl.when(i == pl.num_programs(0) - 1)
        def _finalize():
            bce = -bce_acc[...] / n_valid                     # (1, 1)
            sev = sev_penalty * num_acc[...] / (den_acc[...] + 1e-10)

            # BaselinePositiveLoss
            p1 = _sigmoid(jnp.sum(dmean_ref[...] * w, axis=-1,
                                  keepdims=True) + bias)      # (1, 1)
            p2 = _sigmoid(jnp.sum(fmean_ref[...] * w, axis=-1,
                                  keepdims=True) + bias)      # (1, 1)
            pos = positive_penalty * (jnp.maximum(p1 - 0.5, -0.05) +
                                      jnp.maximum(p2 - 0.5, -0.05))

            bce_o[...] = bce
            sev_o[...] = sev
            total_o[...] = bce + sev + pos

    return kernel


def all_opt_minus_forward(output, target, x, data_map, flexible_mean_map,
                          data_mean, flexible_mean, w,
                          bias=BIAS, sev_penalty=SEV_PENALTY,
                          positive_penalty=POSITIVE_PENALTY):
    """Returns (bce_loss, bce_loss + sev_loss + positive_loss, sev_loss),
    matching the PyTorch forward: scalar, (1,1), scalar."""
    f32 = jnp.float32
    N, D = x.shape
    M = data_map.shape[0]

    # Batch tiling (rows per grid step); multiple of 8 sublanes.
    TILE_N = min(512, _round_up(N, 8))
    num_tiles = pl.cdiv(N, TILE_N)
    N_pad = num_tiles * TILE_N

    x = x.astype(f32)
    output = output.astype(f32)
    target = target.astype(f32)
    dm = data_map.astype(f32)
    fm = flexible_mean_map.astype(f32)
    w_row = w.reshape(1, D).astype(f32)
    dmean2 = data_mean.reshape(1, D).astype(f32)
    fmean2 = flexible_mean.reshape(1, D).astype(f32)

    if N_pad != N:
        pad = N_pad - N
        x = jnp.pad(x, ((0, pad), (0, 0)))
        output = jnp.pad(output, ((0, pad), (0, 0)), constant_values=0.5)
        target = jnp.pad(target, ((0, pad), (0, 0)))

    # Tiny layout-only precompute (feeds the single MXU matmul in the kernel).
    keep_T = jnp.where(dm == 0.0, 1.0, 0.0).astype(f32).T          # (D, M)
    c = jnp.sum(jnp.where(dm == 0.0, 0.0, fm) * w_row,
                axis=1).reshape(1, M).astype(f32)                  # (1, M)

    kernel = _make_kernel(float(bias), float(sev_penalty),
                          float(positive_penalty), N, TILE_N)

    out_shapes = (jax.ShapeDtypeStruct((1, 1), f32),
                  jax.ShapeDtypeStruct((1, 1), f32),
                  jax.ShapeDtypeStruct((1, 1), f32))

    # TODO(synk): for v7x two-TC sharding, emit per-tile partial sums with a
    # "parallel" N axis and combine in a tiny second pass; here the N axis is
    # a sequential ("arbitrary") reduction into the scratch accumulators.
    bce, total, sev = pl.pallas_call(
        kernel,
        out_shape=out_shapes,
        grid_spec=pltpu.PrefetchScalarGridSpec(
            num_scalar_prefetch=0,
            grid=(num_tiles,),
            in_specs=[
                pl.BlockSpec((TILE_N, 1), lambda i: (i, 0)),   # output
                pl.BlockSpec((TILE_N, 1), lambda i: (i, 0)),   # target
                pl.BlockSpec((TILE_N, D), lambda i: (i, 0)),   # x
                pl.BlockSpec((D, M), lambda i: (0, 0)),        # keep^T
                pl.BlockSpec((1, M), lambda i: (0, 0)),        # c offsets
                pl.BlockSpec((1, D), lambda i: (0, 0)),        # w (row)
                pl.BlockSpec((1, D), lambda i: (0, 0)),        # data_mean
                pl.BlockSpec((1, D), lambda i: (0, 0)),        # flexible_mean
            ],
            out_specs=[pl.BlockSpec((1, 1), lambda i: (0, 0)),
                       pl.BlockSpec((1, 1), lambda i: (0, 0)),
                       pl.BlockSpec((1, 1), lambda i: (0, 0))],
            scratch_shapes=[pltpu.VMEM((1, 1), f32)
                            for _ in range(3)],                # bce/num/den acc
        ),
        compiler_params=pltpu.CompilerParams(
            dimension_semantics=("arbitrary",)),
    )(output, target, x, keep_T, c, w_row, dmean2, fmean2)

    return bce[0, 0], total, sev[0, 0]


def _reference(output, target, x, data_map, flexible_mean_map,
               data_mean, flexible_mean, w,
               bias=BIAS, sev_penalty=SEV_PENALTY,
               positive_penalty=POSITIVE_PENALTY):
    """Pure-JAX transcription of the PyTorch forward, for verification."""
    def model(z):
        return jax.nn.sigmoid(z @ w + bias)

    dataset = jnp.where(data_map[:, None, :] == 0.0,
                        x[None, :, :], flexible_mean_map[:, None, :])  # (M, N, D)
    out = model(dataset)                                               # (M, N, 1)
    y_pred = model(x)                                                  # (N, 1)
    gt = (y_pred > 0.5)
    sev = sev_penalty * jnp.sum(
        jnp.maximum(jnp.min(out, axis=0) - 0.5, -0.05) * gt) / (jnp.sum(gt) + 1e-10)
    pos = positive_penalty * (
        jnp.maximum(model(data_mean.reshape(1, -1)) - 0.5, -0.05) +
        jnp.maximum(model(flexible_mean.reshape(1, -1)) - 0.5, -0.05))  # (1, 1)
    log_o = jnp.maximum(jnp.log(output), -100.0)
    log_1mo = jnp.maximum(jnp.log(1.0 - output), -100.0)
    bce = -jnp.mean(target * log_o + (1.0 - target) * log_1mo)
    return bce, bce + sev + pos, sev


if __name__ == "__main__":
    key = jax.random.PRNGKey(0)
    k1, k2, k3, k4, k5, k6, k7 = jax.random.split(key, 7)

    N, D, M = 8, 16, 16   # batch, features, SEV reference rows

    x = jax.random.normal(k1, (N, D), jnp.float32)
    w = 0.5 * jax.random.normal(k2, (D, 1), jnp.float32)
    data_map = (jax.random.uniform(k3, (M, D)) > 0.5).astype(jnp.float32)
    data_mean = 0.1 * jax.random.normal(k4, (D,), jnp.float32)
    flexible_mean = 0.1 * jax.random.normal(k5, (D,), jnp.float32)
    flexible_mean_map = jnp.broadcast_to(flexible_mean[None, :], (M, D))

    # `output` must be valid probabilities for BCELoss; `target` in {0, 1}.
    output = jax.nn.sigmoid(jax.random.normal(k6, (N, 1), jnp.float32))
    target = (jax.random.uniform(k7, (N, 1)) > 0.5).astype(jnp.float32)

    res = all_opt_minus_forward(output, target, x, data_map, flexible_mean_map,
                                data_mean, flexible_mean, w)
    res = jax.block_until_ready(res)

    ref = _reference(output, target, x, data_map, flexible_mean_map,
                     data_mean, flexible_mean, w)
    for got, want in zip(res, ref):
        np.testing.assert_allclose(np.asarray(got), np.asarray(want),
                                   rtol=1e-4, atol=1e-5)

    print("KERNEL_OK")
</pallas_src>

<mosaic_0001>
module attributes {stable_mosaic.version = 11 : i64} {
  func.func @kernel(%arg0: i32, %arg1: memref<8x1xf32, #tpu.memory_space<vmem>>, %arg2: memref<8x1xf32, #tpu.memory_space<vmem>>, %arg3: memref<8x16xf32, #tpu.memory_space<vmem>>, %arg4: memref<16x16xf32, #tpu.memory_space<vmem>>, %arg5: memref<1x16xf32, #tpu.memory_space<vmem>>, %arg6: memref<1x16xf32, #tpu.memory_space<vmem>>, %arg7: memref<1x16xf32, #tpu.memory_space<vmem>>, %arg8: memref<1x16xf32, #tpu.memory_space<vmem>>, %arg9: memref<1x1xf32, #tpu.memory_space<vmem>>, %arg10: memref<1x1xf32, #tpu.memory_space<vmem>>, %arg11: memref<1x1xf32, #tpu.memory_space<vmem>>, %arg12: memref<1x1xf32, #tpu.memory_space<vmem>>, %arg13: memref<1x1xf32, #tpu.memory_space<vmem>>, %arg14: memref<1x1xf32, #tpu.memory_space<vmem>>) attributes {dimension_semantics = [#tpu.dimension_semantics<arbitrary>], iteration_bounds = array<i64: 1>, scalar_prefetch = 0 : i64, scratch_operands = 3 : i64, tpu.core_type = #tpu.core_type<tc>, window_params = [{transform_indices = @transform_0, window_bounds = array<i64: 8, 1>}, {transform_indices = @transform_1, window_bounds = array<i64: 8, 1>}, {transform_indices = @transform_2, window_bounds = array<i64: 8, 16>}, {pipeline_mode = #tpu.pipeline_mode<synchronous>, transform_indices = @transform_3, window_bounds = array<i64: 16, 16>}, {pipeline_mode = #tpu.pipeline_mode<synchronous>, transform_indices = @transform_4, window_bounds = array<i64: 1, 16>}, {pipeline_mode = #tpu.pipeline_mode<synchronous>, transform_indices = @transform_5, window_bounds = array<i64: 1, 16>}, {pipeline_mode = #tpu.pipeline_mode<synchronous>, transform_indices = @transform_6, window_bounds = array<i64: 1, 16>}, {pipeline_mode = #tpu.pipeline_mode<synchronous>, transform_indices = @transform_7, window_bounds = array<i64: 1, 16>}, {pipeline_mode = #tpu.pipeline_mode<synchronous>, transform_indices = @transform_8, window_bounds = array<i64: 1, 1>}, {pipeline_mode = #tpu.pipeline_mode<synchronous>, transform_indices = @transform_9, window_bounds = array<i64: 1, 1>}, {pipeline_mode = #tpu.pipeline_mode<synchronous>, transform_indices = @transform_10, window_bounds = array<i64: 1, 1>}]} {
    %c0_i32 = arith.constant 0 : i32
    %0 = arith.cmpi eq, %arg0, %c0_i32 : i32
    %1 = arith.extui %0 : i1 to i32
    %c0_i32_0 = arith.constant 0 : i32
    %2 = arith.cmpi ne, %1, %c0_i32_0 : i32
    scf.if %2 {
      %cst_47 = arith.constant 0.000000e+00 : f32
      %95 = vector.broadcast %cst_47 : f32 to vector<1x1xf32>
      %c0_48 = arith.constant 0 : index
      %c0_49 = arith.constant 0 : index
      %96 = vector.load %arg12[%c0_48, %c0_49] : memref<1x1xf32, #tpu.memory_space<vmem>>, vector<1x1xf32>
      tpu.vector_store %arg12[%c0_48, %c0_49], %95 {strides = array<i32>} : memref<1x1xf32, #tpu.memory_space<vmem>>, vector<1x1xf32>,
      %cst_50 = arith.constant 0.000000e+00 : f32
      %97 = vector.broadcast %cst_50 : f32 to vector<1x1xf32>
      %c0_51 = arith.constant 0 : index
      %c0_52 = arith.constant 0 : index
      %98 = vector.load %arg13[%c0_51, %c0_52] : memref<1x1xf32, #tpu.memory_space<vmem>>, vector<1x1xf32>
      tpu.vector_store %arg13[%c0_51, %c0_52], %97 {strides = array<i32>} : memref<1x1xf32, #tpu.memory_space<vmem>>, vector<1x1xf32>,
      %cst_53 = arith.constant 0.000000e+00 : f32
      %99 = vector.broadcast %cst_53 : f32 to vector<1x1xf32>
      %c0_54 = arith.constant 0 : index
      %c0_55 = arith.constant 0 : index
      %100 = vector.load %arg14[%c0_54, %c0_55] : memref<1x1xf32, #tpu.memory_space<vmem>>, vector<1x1xf32>
      tpu.vector_store %arg14[%c0_54, %c0_55], %99 {strides = array<i32>} : memref<1x1xf32, #tpu.memory_space<vmem>>, vector<1x1xf32>,
    } else {
    }
    %c0 = arith.constant 0 : index
    %c0_1 = arith.constant 0 : index
    %3 = vector.load %arg3[%c0, %c0_1] : memref<8x16xf32, #tpu.memory_space<vmem>>, vector<8x16xf32>
    %c0_2 = arith.constant 0 : index
    %c0_3 = arith.constant 0 : index
    %4 = vector.load %arg6[%c0_2, %c0_3] : memref<1x16xf32, #tpu.memory_space<vmem>>, vector<1x16xf32>
    %5 = vector.broadcast %4 : vector<1x16xf32> to vector<8x16xf32>
    %6 = arith.mulf %3, %5 : vector<8x16xf32>
    %c0_4 = arith.constant 0 : index
    %c0_5 = arith.constant 0 : index
    %7 = vector.load %arg4[%c0_4, %c0_5] : memref<16x16xf32, #tpu.memory_space<vmem>>, vector<16x16xf32>
    %cst = arith.constant dense<0.000000e+00> : vector<8x16xf32>
    %8 = tpu.matmul %6, %7, %cst {dimension_numbers = #tpu.dot_dimension_numbers<[1], [0], [0], [1], [0, 0, 1, 1], [], []>} : vector<8x16xf32>, vector<16x16xf32>, vector<8x16xf32> -> vector<8x16xf32>
    %c0_6 = arith.constant 0 : index
    %c0_7 = arith.constant 0 : index
    %9 = vector.load %arg5[%c0_6, %c0_7] : memref<1x16xf32, #tpu.memory_space<vmem>>, vector<1x16xf32>
    %10 = vector.broadcast %9 : vector<1x16xf32> to vector<8x16xf32>
    %11 = arith.addf %8, %10 : vector<8x16xf32>
    %cst_8 = arith.constant 1.000000e-01 : f32
    %12 = vector.broadcast %cst_8 : f32 to vector<8x16xf32>
    %13 = arith.addf %11, %12 : vector<8x16xf32>
    %cst_9 = arith.constant 0.000000e+00 : f32
    %14 = vector.broadcast %cst_9 : f32 to vector<8x16xf32>
    %15 = arith.subf %14, %13 : vector<8x16xf32>
    %16 = math.exp %15 : vector<8x16xf32>
    %cst_10 = arith.constant 1.000000e+00 : f32
    %17 = vector.broadcast %cst_10 : f32 to vector<8x16xf32>
    %18 = arith.addf %17, %16 : vector<8x16xf32>
    %cst_11 = arith.constant 1.000000e+00 : f32
    %19 = vector.broadcast %cst_11 : f32 to vector<8x16xf32>
    %20 = arith.divf %19, %18 : vector<8x16xf32>
    %cst_12 = arith.constant dense<0x7F800000> : vector<8xf32>
    %21 = vector.multi_reduction <minimumf>, %20, %cst_12 [1] : vector<8x16xf32> to vector<8xf32>
    %22 = vector.shape_cast %21 : vector<8xf32> to vector<8x1xf32>
    %cst_13 = arith.constant dense<0.000000e+00> : vector<8xf32>
    %23 = vector.multi_reduction <add>, %6, %cst_13 [1] : vector<8x16xf32> to vector<8xf32>
    %24 = vector.shape_cast %23 : vector<8xf32> to vector<8x1xf32>
    %cst_14 = arith.constant 1.000000e-01 : f32
    %25 = vector.broadcast %cst_14 : f32 to vector<8x1xf32>
    %26 = arith.addf %24, %25 : vector<8x1xf32>
    %cst_15 = arith.constant 0.000000e+00 : f32
    %27 = vector.broadcast %cst_15 : f32 to vector<8x1xf32>
    %28 = arith.subf %27, %26 : vector<8x1xf32>
    %29 = math.exp %28 : vector<8x1xf32>
    %cst_16 = arith.constant 1.000000e+00 : f32
    %30 = vector.broadcast %cst_16 : f32 to vector<8x1xf32>
    %31 = arith.addf %30, %29 : vector<8x1xf32>
    %cst_17 = arith.constant 1.000000e+00 : f32
    %32 = vector.broadcast %cst_17 : f32 to vector<8x1xf32>
    %33 = arith.divf %32, %31 : vector<8x1xf32>
    %c8_i32 = arith.constant 8 : i32
    %34 = arith.muli %arg0, %c8_i32 : i32
    %35 = tpu.iota {dimensions = array<i32: 0>} : vector<8x1xi32>
    %36 = vector.broadcast %34 : i32 to vector<8x1xi32>
    %37 = arith.addi %36, %35 : vector<8x1xi32>
    %c8_i32_18 = arith.constant 8 : i32
    %38 = vector.broadcast %c8_i32_18 : i32 to vector<8x1xi32>
    %39 = arith.cmpi slt, %37, %38 : vector<8x1xi32>
    %40 = arith.extui %39 : vector<8x1xi1> to vector<8x1xi32>
    %41 = arith.sitofp %40 : vector<8x1xi32> to vector<8x1xf32>
    %cst_19 = arith.constant 5.000000e-01 : f32
    %42 = vector.broadcast %cst_19 : f32 to vector<8x1xf32>
    %43 = arith.cmpf ogt, %33, %42 : vector<8x1xf32>
    %44 = arith.extui %43 : vector<8x1xi1> to vector<8x1xi32>
    %45 = arith.sitofp %44 : vector<8x1xi32> to vector<8x1xf32>
    %46 = arith.mulf %45, %41 : vector<8x1xf32>
    %c0_20 = arith.constant 0 : index
    %c0_21 = arith.constant 0 : index
    %47 = vector.load %arg13[%c0_20, %c0_21] : memref<1x1xf32, #tpu.memory_space<vmem>>, vector<1x1xf32>
    %cst_22 = arith.constant 5.000000e-01 : f32
    %48 = vector.broadcast %cst_22 : f32 to vector<8x1xf32>
    %49 = arith.subf %22, %48 : vector<8x1xf32>
    %cst_23 = arith.constant -5.000000e-02 : f32
    %50 = vector.broadcast %cst_23 : f32 to vector<8x1xf32>
    %51 = arith.maximumf %49, %50 : vector<8x1xf32>
    %52 = arith.mulf %51, %46 : vector<8x1xf32>
    %53 = vector.shape_cast %52 : vector<8x1xf32> to vector<1x8x1xf32>
    %cst_24 = arith.constant dense<0.000000e+00> : vector<1xf32>
    %54 = vector.multi_reduction <add>, %53, %cst_24 [1, 2] : vector<1x8x1xf32> to vector<1xf32>
    %55 = vector.shape_cast %54 : vector<1xf32> to vector<1x1x1xf32>
    %56 = vector.extract %55[0, 0, 0] : f32 from vector<1x1x1xf32>
    %57 = vector.broadcast %56 : f32 to vector<1x1xf32>
    %58 = arith.addf %47, %57 : vector<1x1xf32>
    %c0_25 = arith.constant 0 : index
    %c0_26 = arith.constant 0 : index
    %59 = vector.load %arg13[%c0_25, %c0_26] : memref<1x1xf32, #tpu.memory_space<vmem>>, vector<1x1xf32>
    tpu.vector_store %arg13[%c0_25, %c0_26], %58 {strides = array<i32>} : memref<1x1xf32, #tpu.memory_space<vmem>>, vector<1x1xf32>,
    %c0_27 = arith.constant 0 : index
    %c0_28 = arith.constant 0 : index
    %60 = vector.load %arg14[%c0_27, %c0_28] : memref<1x1xf32, #tpu.memory_space<vmem>>, vector<1x1xf32>
    %61 = vector.shape_cast %46 : vector<8x1xf32> to vector<1x8x1xf32>
    %cst_29 = arith.constant dense<0.000000e+00> : vector<1xf32>
    %62 = vector.multi_reduction <add>, %61, %cst_29 [1, 2] : vector<1x8x1xf32> to vector<1xf32>
    %63 = vector.shape_cast %62 : vector<1xf32> to vector<1x1x1xf32>
    %64 = vector.extract %63[0, 0, 0] : f32 from vector<1x1x1xf32>
    %65 = vector.broadcast %64 : f32 to vector<1x1xf32>
    %66 = arith.addf %60, %65 : vector<1x1xf32>
    %c0_30 = arith.constant 0 : index
    %c0_31 = arith.constant 0 : index
    %67 = vector.load %arg14[%c0_30, %c0_31] : memref<1x1xf32, #tpu.memory_space<vmem>>, vector<1x1xf32>
    tpu.vector_store %arg14[%c0_30, %c0_31], %66 {strides = array<i32>} : memref<1x1xf32, #tpu.memory_space<vmem>>, vector<1x1xf32>,
    %c0_32 = arith.constant 0 : index
    %c0_33 = arith.constant 0 : index
    %68 = vector.load %arg1[%c0_32, %c0_33] : memref<8x1xf32, #tpu.memory_space<vmem>>, vector<8x1xf32>
    %c0_34 = arith.constant 0 : index
    %c0_35 = arith.constant 0 : index
    %69 = vector.load %arg2[%c0_34, %c0_35] : memref<8x1xf32, #tpu.memory_space<vmem>>, vector<8x1xf32>
    %70 = math.log %68 : vector<8x1xf32>
    %cst_36 = arith.constant -1.000000e+02 : f32
    %71 = vector.broadcast %cst_36 : f32 to vector<8x1xf32>
    %72 = arith.maximumf %70, %71 : vector<8x1xf32>
    %cst_37 = arith.constant 1.000000e+00 : f32
    %73 = vector.broadcast %cst_37 : f32 to vector<8x1xf32>
    %74 = arith.subf %73, %68 : vector<8x1xf32>
    %75 = math.log %74 : vector<8x1xf32>
    %cst_38 = arith.constant -1.000000e+02 : f32
    %76 = vector.broadcast %cst_38 : f32 to vector<8x1xf32>
    %77 = arith.maximumf %75, %76 : vector<8x1xf32>
    %c0_39 = arith.constant 0 : index
    %c0_40 = arith.constant 0 : index
    %78 = vector.load %arg12[%c0_39, %c0_40] : memref<1x1xf32, #tpu.memory_space<vmem>>, vector<1x1xf32>
    %79 = arith.mulf %69, %72 : vector<8x1xf32>
    %cst_41 = arith.constant 1.000000e+00 : f32
    %80 = vector.broadcast %cst_41 : f32 to vector<8x1xf32>
    %81 = arith.subf %80, %69 : vector<8x1xf32>
    %82 = arith.mulf %81, %77 : vector<8x1xf32>
    %83 = arith.addf %79, %82 : vector<8x1xf32>
    %84 = arith.mulf %83, %41 : vector<8x1xf32>
    %85 = vector.shape_cast %84 : vector<8x1xf32> to vector<1x8x1xf32>
    %cst_42 = arith.constant dense<0.000000e+00> : vector<1xf32>
    %86 = vector.multi_reduction <add>, %85, %cst_42 [1, 2] : vector<1x8x1xf32> to vector<1xf32>
    %87 = vector.shape_cast %86 : vector<1xf32> to vector<1x1x1xf32>
    %88 = vector.extract %87[0, 0, 0] : f32 from vector<1x1x1xf32>
    %89 = vector.broadcast %88 : f32 to vector<1x1xf32>
    %90 = arith.addf %78, %89 : vector<1x1xf32>
    %c0_43 = arith.constant 0 : index
    %c0_44 = arith.constant 0 : index
    %91 = vector.load %arg12[%c0_43, %c0_44] : memref<1x1xf32, #tpu.memory_space<vmem>>, vector<1x1xf32>
    tpu.vector_store %arg12[%c0_43, %c0_44], %90 {strides = array<i32>} : memref<1x1xf32, #tpu.memory_space<vmem>>, vector<1x1xf32>,
    %c0_i32_45 = arith.constant 0 : i32
    %92 = arith.cmpi eq, %arg0, %c0_i32_45 : i32
    %93 = arith.extui %92 : i1 to i32
    %c0_i32_46 = arith.constant 0 : i32
    %94 = arith.cmpi ne, %93, %c0_i32_46 : i32
    scf.if %94 {
      %c0_47 = arith.constant 0 : index
      %c0_48 = arith.constant 0 : index
      %95 = vector.load %arg12[%c0_47, %c0_48] : memref<1x1xf32, #tpu.memory_space<vmem>>, vector<1x1xf32>
      %cst_49 = arith.constant 0.000000e+00 : f32
      %96 = vector.broadcast %cst_49 : f32 to vector<1x1xf32>
      %97 = arith.subf %96, %95 : vector<1x1xf32>
      %cst_50 = arith.constant 8.000000e+00 : f32
      %98 = vector.broadcast %cst_50 : f32 to vector<1x1xf32>
      %99 = arith.divf %97, %98 : vector<1x1xf32>
      %c0_51 = arith.constant 0 : index
      %c0_52 = arith.constant 0 : index
      %100 = vector.load %arg13[%c0_51, %c0_52] : memref<1x1xf32, #tpu.memory_space<vmem>>, vector<1x1xf32>
      %cst_53 = arith.constant 1.000000e-01 : f32
      %101 = vector.broadcast %cst_53 : f32 to vector<1x1xf32>
      %102 = arith.mulf %101, %100 : vector<1x1xf32>
      %c0_54 = arith.constant 0 : index
      %c0_55 = arith.constant 0 : index
      %103 = vector.load %arg14[%c0_54, %c0_55] : memref<1x1xf32, #tpu.memory_space<vmem>>, vector<1x1xf32>
      %cst_56 = arith.constant 1.000000e-10 : f32
      %104 = vector.broadcast %cst_56 : f32 to vector<1x1xf32>
      %105 = arith.addf %103, %104 : vector<1x1xf32>
      %106 = arith.divf %102, %105 : vector<1x1xf32>
      %c0_57 = arith.constant 0 : index
      %c0_58 = arith.constant 0 : index
      %107 = vector.load %arg7[%c0_57, %c0_58] : memref<1x16xf32, #tpu.memory_space<vmem>>, vector<1x16xf32>
      %108 = arith.mulf %107, %4 : vector<1x16xf32>
      %cst_59 = arith.constant dense<0.000000e+00> : vector<1xf32>
      %109 = vector.multi_reduction <add>, %108, %cst_59 [1] : vector<1x16xf32> to vector<1xf32>
      %110 = vector.shape_cast %109 : vector<1xf32> to vector<1x1xf32>
      %cst_60 = arith.constant 1.000000e-01 : f32
      %111 = vector.broadcast %cst_60 : f32 to vector<1x1xf32>
      %112 = arith.addf %110, %111 : vector<1x1xf32>
      %cst_61 = arith.constant 0.000000e+00 : f32
      %113 = vector.broadcast %cst_61 : f32 to vector<1x1xf32>
      %114 = arith.subf %113, %112 : vector<1x1xf32>
      %115 = math.exp %114 : vector<1x1xf32>
      %cst_62 = arith.constant 1.000000e+00 : f32
      %116 = vector.broadcast %cst_62 : f32 to vector<1x1xf32>
      %117 = arith.addf %116, %115 : vector<1x1xf32>
      %cst_63 = arith.constant 1.000000e+00 : f32
      %118 = vector.broadcast %cst_63 : f32 to vector<1x1xf32>
      %119 = arith.divf %118, %117 : vector<1x1xf32>
      %c0_64 = arith.constant 0 : index
      %c0_65 = arith.constant 0 : index
      %120 = vector.load %arg8[%c0_64, %c0_65] : memref<1x16xf32, #tpu.memory_space<vmem>>, vector<1x16xf32>
      %121 = arith.mulf %120, %4 : vector<1x16xf32>
      %cst_66 = arith.constant dense<0.000000e+00> : vector<1xf32>
      %122 = vector.multi_reduction <add>, %121, %cst_66 [1] : vector<1x16xf32> to vector<1xf32>
      %123 = vector.shape_cast %122 : vector<1xf32> to vector<1x1xf32>
      %cst_67 = arith.constant 1.000000e-01 : f32
      %124 = vector.broadcast %cst_67 : f32 to vector<1x1xf32>
      %125 = arith.addf %123, %124 : vector<1x1xf32>
      %cst_68 = arith.constant 0.000000e+00 : f32
      %126 = vector.broadcast %cst_68 : f32 to vector<1x1xf32>
      %127 = arith.subf %126, %125 : vector<1x1xf32>
      %128 = math.exp %127 : vector<1x1xf32>
      %cst_69 = arith.constant 1.000000e+00 : f32
      %129 = vector.broadcast %cst_69 : f32 to vector<1x1xf32>
      %130 = arith.addf %129, %128 : vector<1x1xf32>
      %cst_70 = arith.constant 1.000000e+00 : f32
      %131 = vector.broadcast %cst_70 : f32 to vector<1x1xf32>
      %132 = arith.divf %131, %130 : vector<1x1xf32>
      %cst_71 = arith.constant 5.000000e-01 : f32
      %133 = vector.broadcast %cst_71 : f32 to vector<1x1xf32>
      %134 = arith.subf %119, %133 : vector<1x1xf32>
      %cst_72 = arith.constant -5.000000e-02 : f32
      %135 = vector.broadcast %cst_72 : f32 to vector<1x1xf32>
      %136 = arith.maximumf %134, %135 : vector<1x1xf32>
      %cst_73 = arith.constant 5.000000e-01 : f32
      %137 = vector.broadcast %cst_73 : f32 to vector<1x1xf32>
      %138 = arith.subf %132, %137 : vector<1x1xf32>
      %cst_74 = arith.constant -5.000000e-02 : f32
      %139 = vector.broadcast %cst_74 : f32 to vector<1x1xf32>
      %140 = arith.maximumf %138, %139 : vector<1x1xf32>
      %141 = arith.addf %136, %140 : vector<1x1xf32>
      %cst_75 = arith.constant 1.000000e-01 : f32
      %142 = vector.broadcast %cst_75 : f32 to vector<1x1xf32>
      %143 = arith.mulf %142, %141 : vector<1x1xf32>
      %c0_76 = arith.constant 0 : index
      %c0_77 = arith.constant 0 : index
      %144 = vector.load %arg9[%c0_76, %c0_77] : memref<1x1xf32, #tpu.memory_space<vmem>>, vector<1x1xf32>
      tpu.vector_store %arg9[%c0_76, %c0_77], %99 {strides = array<i32>} : memref<1x1xf32, #tpu.memory_space<vmem>>, vector<1x1xf32>,
      %c0_78 = arith.constant 0 : index
      %c0_79 = arith.constant 0 : index
      %145 = vector.load %arg11[%c0_78, %c0_79] : memref<1x1xf32, #tpu.memory_space<vmem>>, vector<1x1xf32>
      tpu.vector_store %arg11[%c0_78, %c0_79], %106 {strides = array<i32>} : memref<1x1xf32, #tpu.memory_space<vmem>>, vector<1x1xf32>,
      %146 = arith.addf %99, %106 : vector<1x1xf32>
      %147 = arith.addf %146, %143 : vector<1x1xf32>
      %c0_80 = arith.constant 0 : index
      %c0_81 = arith.constant 0 : index
      %148 = vector.load %arg10[%c0_80, %c0_81] : memref<1x1xf32, #tpu.memory_space<vmem>>, vector<1x1xf32>
      tpu.vector_store %arg10[%c0_80, %c0_81], %147 {strides = array<i32>} : memref<1x1xf32, #tpu.memory_space<vmem>>, vector<1x1xf32>,
    } else {
    }
    return
  }
  func.func @transform_0(%arg0: i32) -> (i32, i32) {
    %c0_i32 = arith.constant 0 : i32
    %c0_i32_0 = arith.constant 0 : i32
    return %arg0, %c0_i32 : i32, i32
  }
  func.func @transform_1(%arg0: i32) -> (i32, i32) {
    %c0_i32 = arith.constant 0 : i32
    %c0_i32_0 = arith.constant 0 : i32
    return %arg0, %c0_i32 : i32, i32
  }
  func.func @transform_2(%arg0: i32) -> (i32, i32) {
    %c0_i32 = arith.constant 0 : i32
    %c0_i32_0 = arith.constant 0 : i32
    return %arg0, %c0_i32 : i32, i32
  }
  func.func @transform_3(%arg0: i32) -> (i32, i32) {
    %c0_i32 = arith.constant 0 : i32
    %c0_i32_0 = arith.constant 0 : i32
    %c0_i32_1 = arith.constant 0 : i32
    return %c0_i32, %c0_i32_0 : i32, i32
  }
  func.func @transform_4(%arg0: i32) -> (i32, i32) {
    %c0_i32 = arith.constant 0 : i32
    %c0_i32_0 = arith.constant 0 : i32
    %c0_i32_1 = arith.constant 0 : i32
    return %c0_i32, %c0_i32_0 : i32, i32
  }
  func.func @transform_5(%arg0: i32) -> (i32, i32) {
    %c0_i32 = arith.constant 0 : i32
    %c0_i32_0 = arith.constant 0 : i32
    %c0_i32_1 = arith.constant 0 : i32
    return %c0_i32, %c0_i32_0 : i32, i32
  }
  func.func @transform_6(%arg0: i32) -> (i32, i32) {
    %c0_i32 = arith.constant 0 : i32
    %c0_i32_0 = arith.constant 0 : i32
    %c0_i32_1 = arith.constant 0 : i32
    return %c0_i32, %c0_i32_0 : i32, i32
  }
  func.func @transform_7(%arg0: i32) -> (i32, i32) {
    %c0_i32 = arith.constant 0 : i32
    %c0_i32_0 = arith.constant 0 : i32
    %c0_i32_1 = arith.constant 0 : i32
    return %c0_i32, %c0_i32_0 : i32, i32
  }
  func.func @transform_8(%arg0: i32) -> (i32, i32) {
    %c0_i32 = arith.constant 0 : i32
    %c0_i32_0 = arith.constant 0 : i32
    %c0_i32_1 = arith.constant 0 : i32
    return %c0_i32, %c0_i32_0 : i32, i32
  }
  func.func @transform_9(%arg0: i32) -> (i32, i32) {
    %c0_i32 = arith.constant 0 : i32
    %c0_i32_0 = arith.constant 0 : i32
    %c0_i32_1 = arith.constant 0 : i32
    return %c0_i32, %c0_i32_0 : i32, i32
  }
  func.func @transform_10(%arg0: i32) -> (i32, i32) {
    %c0_i32 = arith.constant 0 : i32
    %c0_i32_0 = arith.constant 0 : i32
    %c0_i32_1 = arith.constant 0 : i32
    return %c0_i32, %c0_i32_0 : i32, i32
  }
}

</mosaic_0001>

<bundles_post_ra>
// kernel: tpu_custom_call.1
= control target key start
LH: loop header
LB: loop body
LE: loop exit
PB: predicated region body
PF: predicated region fallthrough
CT: control target
= control target key end

     0   :  { %16 = vsyncpa [#allocation6], 0  ;;  %v45_v2 = vlaneseq  ;;  %v440_v3 = vmov 0.0|0.0   ;;  %vm441_vm0 = vmmov 0   ;;  %v442_v5 = vmov 0.0   ;;  %s599_s0 = inlined_call_operand.vmem [shape: f32[8,1], index: 0, kind: input, shape index: {}]   ;;  %s600_s1 = inlined_call_operand.vmem [shape: f32[8,1], index: 1, kind: input, shape index: {}]   ;;  %s601_s2 = inlined_call_operand.vmem [shape: f32[8,16], index: 2, kind: input, shape index: {}]   ;;  %s602_s3 = inlined_call_operand.vmem [shape: f32[16,16], index: 3, kind: input, shape index: {}]   ;;  %s603_s4 = inlined_call_operand.vmem [shape: f32[1,16], index: 4, kind: input, shape index: {}]   ;;  %s604_s5 = inlined_call_operand.vmem [shape: f32[1,16], index: 5, kind: input, shape index: {}]   ;;  %s605_s6 = inlined_call_operand.vmem [shape: f32[1,16], index: 6, kind: input, shape index: {}]   ;;  %s606_s7 = inlined_call_operand.vmem [shape: f32[1,16], index: 7, kind: input, shape index: {}]   ;;  %s607_s8 = inlined_call_operand.hbm [shape: f32[1,1], index: 8, kind: output, shape index: {0}]   ;;  %s608_s9 = inlined_call_operand.hbm [shape: f32[1,1], index: 9, kind: output, shape index: {1}]   ;;  %s609_s10 = inlined_call_operand.hbm [shape: f32[1,1], index: 10, kind: output, shape index: {2}]  }
   0x1   :  { %v51_v0 = vld [vmem:[%s602_s3] sm:$0xff]  ;;  %v52_v1 = vld [vmem:[%s602_s3 + $0x8] sm:$0xff]  ;;  %333 = vmatprep.subr.bf16.mxu0 %v440_v3  ;;  %330 = vmatprep.mubr.msk.f32.mxu0 %vm441_vm0, %v442_v5 }
   0x2   :  { %v334_v4 = vpack.c.bf16 %v52_v1, %v51_v0  ;;  %v46_v6 = vshrl.u32 %v45_v2, 7 }
   0x3   :  { %17 = vsyncpa [#allocation8], 0  ;;  %v511_v7 = vld [vmem:[%s604_s5] sm:$0x1]  ;;  %vm60_vm1 = vcmask 130048   ;;  %vm170_vm2 = vcmask 7168  }
   0x4   :  { %335 = vmatpush3.bf16.msra.mxu0 %v334_v4  ;;  %v47_v8 = vsub.s32 0, %v46_v6  ;;  %v42_v9 = vld [vmem:[%s601_s2] sm:$0xff]  ;;  %vm242_vm3 = vcmask 122880   ;;  %vm38_vm5 = vcmask 0   ;;  %s443_s26 = smov [#allocation5]  }
   0x5   :  { %v317_v13 = vld [vmem:[%s603_s4] ss:$0 sm:$0xff]  ;;  %40 = vst.msk [vmem:[#allocation3] sm:$0x1] %vm38_vm5, %v442_v5  ;;  %39 = vst.msk [vmem:[#allocation2] sm:$0x1] %vm38_vm5, %v442_v5 }
   0x6   :  { %v48_v10 = vrot.slane %v511_v7, %v47_v8  ;;  %v199_v24 = vld [vmem:[%s599_s0] sm:$0xff]  ;;  %41 = vst.msk [vmem:[#allocation4] sm:$0x1] %vm38_vm5, %v442_v5  ;;  %s282_s27 = sshll.u32 %s443_s26, 4  ;;  %s283_s27 = int_to_ptr.vmem [resolvable:$true] %s282_s27 }
   0x7   :  { %v204_v25 = vsub.f32 1.0, %v199_v24  ;;  %v200_v29 = vld [vmem:[%s600_s1] sm:$0xff]  ;;  %s370_s28 = scalar_lea.vmem %s283_s27, 16  ;;  %s374_s29 = scalar_lea.vmem %s283_s27, 32 }
   0x8   :  { %v50_v11 = vmul.f32 %v48_v10, %v42_v9  ;;  %v210_v32 = vsub.f32 1.0, %v200_v29  ;;  %v253_v35 = vld [vmem:[%s606_s7] sm:$0x1]  ;;  %p371_p0 = scmp.ne.s32.totalorder %s283_s27, %s370_s28  ;;  %p375_p1 = scmp.lt.s32.totalorder %s283_s27, %s283_s27 }
   0x9   :  { %v254_v38 = vmul.f32 %v253_v35, %v511_v7  ;;  %v240_v53 = vld [vmem:[%s605_s6] sm:$0x1]  ;;  %p376_p2 = scmp.lt.s32.totalorder %s374_s29, %s370_s28 }
   0xa   :  { %331 = vmatmul.mubr.msk.f32.vlgmr.msra.gmra.mrb[0].mxu0 %vm60_vm1, %v50_v11  ;;  %v144_v12 = vsel %vm60_vm1, %v50_v11, 0.0  ;;  %v241_v55 = vmul.f32 %v240_v53, %v511_v7 }
   0xb   :  { %145 = vadd.xlane.f32.xlu0 %v144_v12  ;;  %v255_v40 = vsel %vm242_vm3, %v254_v38, 0.0  ;;  %p377_p3 = por %p376_p2, %p375_p1 }
   0xc   :  { %v243_v57 = vsel %vm242_vm3, %v241_v55, 0.0 }
   0xd   :  { %p378_p4 = pnand %p377_p3, %p371_p0 }
  0x98   :  { %v146_v41 = vpop.xlane.xlu0 %145 }
  0x99   :  { %v147_v42 = vadd.f32 0.1, %v146_v41 }
  0x9b   :  { %v148_v43 = vsub.f32 0.0, %v147_v42 }
  0x9d   :  { %v149_v44 = vmul.f32 1.442695, %v148_v43 }
  0xdd   :  { %v130_v14 = vpop.f32.mrb[0].mxu0 }
  0xde   :  { %v131_v15 = vadd.f32 %v317_v13, %v130_v14  ;;  %v332_v16 = vpop.f32.mrb[1].mxu0 }
  0xe0   :  { %v134_v17 = vadd.f32 0.1, %v131_v15 }
  0xe2   :  { %v135_v18 = vsub.f32 0.0, %v134_v17 }
  0xe4   :  { %v136_v19 = vmul.f32 1.442695, %v135_v18 }
  0xe6   :  { %348 = vpow2.f32 %v136_v19 }
  0xf0   :  { %v349_v20 = vpop.eup %348 }
  0xf1   :  { %v138_v21 = vadd.f32 1.0, %v349_v20 }
  0xf3   :  { %350 = vrcp.f32 %v138_v21 }
  0xf4   :  { %352 = vlog2.f32 %v199_v24 }
  0xf5   :  { %354 = vlog2.f32 %v204_v25 }
  0xf6   :  { %356 = vpow2.f32 %v149_v44 }
  0xfd   :  { %v351_v22 = vpop.eup %350 }
  0xfe   :  { %v141_v23 = vsel %vm60_vm1, %v351_v22, inf  ;;  %v353_v26 = vpop.eup %352 }
  0xff   :  { %142 = vmin.xlane.f32.xlu0 %v141_v23  ;;  %v355_v27 = vpop.eup %354  ;;  %v202_v28 = vmul.f32 0.6931472, %v353_v26  ;;  %v166_v26 = vld [vmem:[#allocation3] sm:$0x1] }
 0x100   :  { %v206_v30 = vmul.f32 0.6931472, %v355_v27  ;;  %v357_v45 = vpop.eup %356 }
 0x101   :  { %v203_v31 = vmax.f32 %v202_v28, -100.0  ;;  %v151_v46 = vadd.f32 1.0, %v357_v45 }
 0x102   :  { %v207_v33 = vmax.f32 %v206_v30, -100.0  ;;  %v185_v30 = vld [vmem:[#allocation4] sm:$0x1] }
 0x103   :  { %v209_v34 = vmul.f32 %v203_v31, %v200_v29  ;;  %358 = vrcp.f32 %v151_v46  ;;  %v208_v31 = vld [vmem:[#allocation2] sm:$0x1] }
 0x104   :  { %v211_v36 = vmul.f32 %v210_v32, %v207_v33 }
 0x106   :  { %v212_v37 = vadd.f32 %v211_v36, %v209_v34 }
 0x108   :  { %v214_v39 = vsel %vm170_vm2, %v212_v37, 0.0 }
 0x109   :  { %215 = vadd.xlane.f32.xlu0 %v214_v39 }
 0x10d   :  { %256 = vadd.xlane.f32.xlu0 %v255_v40  ;;  %v359_v47 = vpop.eup %358 }
 0x10e   :  { %vm162_vm4 = vcmp.gt.f32.partialorder %v359_v47, 0.5 }
 0x10f   :  { %v319_v50 = vsel %vm162_vm4, 1.0, %v442_v5 }
 0x110   :  { %v186_v56 = vsel %vm170_vm2, %v319_v50, 0.0 }
 0x18c   :  { %v143_v48 = vpop.xlane.xlu0 %142 }
 0x18d   :  { %v320_v49 = vadd.f32 -0.5, %v143_v48 }
 0x18f   :  { %v168_v51 = vmax.f32 %v320_v49, -0.05 }
 0x191   :  { %v169_v52 = vmul.f32 %v319_v50, %v168_v51 }
 0x193   :  { %v171_v54 = vsel %vm170_vm2, %v169_v52, 0.0 }
 0x194   :  { %172 = vadd.xlane.f32.xlu1 %v171_v54 }
 0x196   :  { %v216_v58 = vpop.xlane.xlu0 %215 }
 0x197   :  { %v217_v59 = vrot.slane %v216_v58, 4 }
 0x198   :  { %187 = vadd.xlane.f32.xlu1 %v186_v56 }
 0x199   :  { %v218_v60 = vadd.f32 %v217_v59, %v216_v58 }
 0x19a   :  { %v257_v15 = vpop.xlane.xlu0 %256 }
 0x19b   :  { %v219_v63 = vrot.slane %v218_v60, 2  ;;  %v258_v17 = vadd.f32 0.1, %v257_v15 }
 0x19c   :  { %244 = vadd.xlane.f32.xlu1 %v243_v57 }
 0x19d   :  { %v220_v4 = vadd.f32 %v219_v63, %v218_v60  ;;  %v259_v19 = vsub.f32 0.0, %v258_v17 }
 0x19f   :  { %v221_v10 = vrot.slane %v220_v4, 1  ;;  %v260_v21 = vmul.f32 1.442695, %v259_v19 }
 0x1a1   :  { %v222_v13 = vadd.f32 %v221_v10, %v220_v4  ;;  %360 = vpow2.f32 %v260_v21 }
 0x1ab   :  { %v361_v23 = vpop.eup %360 }
 0x1ac   :  { %v262_v25 = vadd.f32 1.0, %v361_v23 }
 0x221   :  { %v173_v61 = vpop.xlane.xlu1 %172 }
 0x222   :  { %v174_v62 = vrot.slane %v173_v61, 4 }
 0x224   :  { %v175_v0 = vadd.f32 %v174_v62, %v173_v61 }
 0x225   :  { %v188_v1 = vpop.xlane.xlu1 %187 }
 0x226   :  { %v176_v2 = vrot.slane %v175_v0, 2  ;;  %v189_v3 = vrot.slane %v188_v1, 4 }
 0x228   :  { %v190_v6 = vadd.f32 %v189_v3, %v188_v1  ;;  %v177_v7 = vadd.f32 %v176_v2, %v175_v0 }
 0x229   :  { %v245_v16 = vpop.xlane.xlu1 %244 }
 0x22a   :  { %v191_v8 = vrot.slane %v190_v6, 2  ;;  %v178_v9 = vrot.slane %v177_v7, 1  ;;  %v246_v18 = vadd.f32 0.1, %v245_v16 }
 0x22c   :  { %v179_v11 = vadd.f32 %v178_v9, %v177_v7  ;;  %v192_v12 = vadd.f32 %v191_v8, %v190_v6  ;;  %v247_v20 = vsub.f32 0.0, %v246_v18 }
 0x22e   :  { %336 = vpush %v179_v11  ;;  %v193_v5 = vrot.slane %v192_v12, 1  ;;  %v248_v22 = vmul.f32 1.442695, %v247_v20 }
 0x230   :  { %v194_v14 = vadd.f32 %v193_v5, %v192_v12  ;;  %362 = vpow2.f32 %v248_v22 }
 0x231   :  { %364 = vrcp.f32 %v262_v25 }
 0x232   :  { %338 = vpush %v194_v14 }
 0x233   :  { %340 = vpush %v222_v13 }
 0x23a   :  { %v363_v24 = vpop.eup %362 }
 0x23b   :  { %v250_v27 = vadd.f32 1.0, %v363_v24  ;;  %v365_v36 = vpop.eup %364 }
 0x23c   :  { %v322_v42 = vadd.f32 -0.5, %v365_v36 }
 0x23d   :  { %366 = vrcp.f32 %v250_v27 }
 0x23e   :  { %v268_v46 = vmax.f32 %v322_v42, -0.05 }
 0x247   :  { %v367_v37 = vpop.eup %366 }
 0x248   :  { %v321_v41 = vadd.f32 -0.5, %v367_v37 }
 0x24a   :  { %v266_v45 = vmax.f32 %v321_v41, -0.05 }
 0x25f   :  { %s337_s6 = spop %336 }
 0x260   :  { %v181_v28 = vstv %s337_s6 }
 0x261   :  { %v182_v29 = vadd.f32 %v181_v28, %v166_v26 }
 0x263   :  { %184 = vst.msk [vmem:[#allocation3] sm:$0x1] %vm38_vm5, %v182_v29  ;;  %s339_s7 = spop %338 }
 0x264   :  { %v196_v32 = vstv %s339_s7  ;;  %s341_s25 = spop %340 }
 0x265   :  { %v197_v33 = vadd.f32 %v196_v32, %v185_v30  ;;  %v224_v34 = vstv %s341_s25 }
 0x266   :  { %v225_v35 = vadd.f32 %v224_v34, %v208_v31 }
 0x267   :  { %198 = vst.msk [vmem:[#allocation4] sm:$0x1] %vm38_vm5, %v197_v33 }
 0x268   :  { %226 = vst.msk [vmem:[#allocation2] sm:$0x1] %vm38_vm5, %v225_v35 }
 0x26e   :  { %v236_v38 = vld [vmem:[#allocation4] sm:$0x1] }
 0x26f   :  { %v230_v39 = vld [vmem:[#allocation2] sm:$0x1]  ;;  %v237_v40 = vadd.f32 1e-10, %v236_v38 }
 0x270   :  { %v231_v43 = vsub.f32 0.0, %v230_v39 }
 0x271   :  { %368 = vrcp.f32 %v237_v40 }
 0x272   :  { %v233_v44 = vmul.f32 0.125, %v231_v43 }
 0x274   :  { %271 = vst.msk [vmem:[#allocation5] sm:$0x1] %vm38_vm5, %v233_v44 }
 0x275   :  { %381 = shalt.err (!%p378_p4)
}
 0x276   :  { %s382_s12 = scalar_lea.hbm %s607_s8, 16 }
 0x277   :  { %p383_p5 = scmp.ne.s32.totalorder %s607_s8, %s382_s12  ;;  %p386_p6 = scmp.lt.u32.totalorder %s382_s12, %s607_s8 }
 0x279   :  { %p388_p7 = pnand %p386_p6, %p383_p5 }
 0x27b   :  { %391 = shalt.err (!%p388_p7)
}
 0x27c   :  { %285 = dma.vmem_to_hbm [thread:$0]  %s283_s27, 16, %s607_s8, [#allocation6]   ;;  %v234_v47 = vld [vmem:[#allocation3] sm:$0x1]  ;;  %v269_v48 = vadd.f32 %v268_v46, %v266_v45  ;;  %v369_v50 = vpop.eup %368 }
 0x27d   :  { %v235_v49 = vmul.f32 0.1, %v234_v47  ;;  %s444_s19 = smov [#allocation7]   ;;  %s445_s3 = smov [#allocation9]  }
 0x27e   :  { %v270_v52 = vmul.f32 0.1, %v269_v48  ;;  %s292_s20 = sshll.u32 %s444_s19, 4  ;;  %s302_s21 = sshll.u32 %s445_s3, 4  ;;  %s293_s20 = int_to_ptr.vmem [resolvable:$true] %s292_s20  ;;  %s566_s21 = int_to_ptr.vmem [resolvable:$true] %s302_s21 }
 0x27f   :  { %v239_v51 = vmul.f32 %v369_v50, %v235_v49  ;;  %s392_s8 = scalar_lea.vmem %s293_s20, 16  ;;  %s396_s2 = scalar_lea.vmem %s293_s20, 32 }
 0x280   :  { %p393_p8 = scmp.ne.s32.totalorder %s293_s20, %s392_s8  ;;  %p397_p9 = scmp.lt.s32.totalorder %s293_s20, %s293_s20 }
 0x281   :  { %v273_v53 = vadd.f32 %v239_v51, %v233_v44  ;;  %272 = vst.msk [vmem:[#allocation9] sm:$0x1] %vm38_vm5, %v239_v51  ;;  %p398_p10 = scmp.lt.s32.totalorder %s396_s2, %s392_s8 }
 0x283   :  { %v274_v54 = vadd.f32 %v273_v53, %v270_v52  ;;  %p399_p11 = por %p398_p10, %p397_p9 }
 0x285   :  { %275 = vst.msk [vmem:[#allocation7] sm:$0x1] %vm38_vm5, %v274_v54  ;;  %p400_p12 = pnand %p399_p11, %p393_p8 }
 0x287   :  { %403 = shalt.err (!%p400_p12)
}
 0x288   :  { %s404_s22 = scalar_lea.hbm %s608_s9, 16 }
 0x289   :  { %p405_p13 = scmp.ne.s32.totalorder %s608_s9, %s404_s22  ;;  %p408_p0 = scmp.lt.u32.totalorder %s404_s22, %s608_s9 }
 0x28b   :  { %p410_p1 = pnand %p408_p0, %p405_p13 }
 0x28d   :  { %413 = shalt.err (!%p410_p1)
}
 0x28e   :  { %295 = dma.vmem_to_hbm [thread:$0]  %s293_s20, 16, %s608_s9, [#allocation8]  }
 0x28f   :  { %s414_s25 = scalar_lea.vmem %s566_s21, 16  ;;  %s418_s26 = scalar_lea.vmem %s566_s21, 32 }
 0x290   :  { %p415_p2 = scmp.ne.s32.totalorder %s566_s21, %s414_s25  ;;  %p419_p3 = scmp.lt.s32.totalorder %s566_s21, %s566_s21 }
 0x291   :  { %p420_p4 = scmp.lt.s32.totalorder %s418_s26, %s414_s25 }
 0x293   :  { %p421_p5 = por %p420_p4, %p419_p3 }
 0x295   :  { %p422_p6 = pnand %p421_p5, %p415_p2 }
 0x297   :  { %425 = shalt.err (!%p422_p6)
}
 0x298   :  { %s426_s29 = scalar_lea.hbm %s609_s10, 16 }
 0x299   :  { %p427_p7 = scmp.ne.s32.totalorder %s609_s10, %s426_s29  ;;  %p430_p8 = scmp.lt.u32.totalorder %s426_s29, %s609_s10 }
 0x29b   :  { %p432_p9 = pnand %p430_p8, %p427_p7 }
 0x29d   :  { %435 = shalt.err (!%p432_p9)
}
 0x29e   :  { %305 = dma.vmem_to_hbm [thread:$0]  %s566_s21, 16, %s609_s10, [#allocation8]  }
 0x29f   :  { %436 = dma.done.wait [#allocation6], 16  }
 0x2a0   :  { %437 = vsyncadd [#allocation6], 4294967280 }
 0x2a1   :  { %438 = dma.done.wait [#allocation8], 32  }
 0x2a2   :  { %439 = vsyncadd [#allocation8], 4294967264 }
 0x2a3   :  { %315 = vsyncpa [#allocation6], 1 }
 0x2a4   :  { %316 = vsyncpa [#allocation8], 1 }

</bundles_post_ra>
